<compile_context>
chip_gen: v5e
topology: v5e:2x2
jax: 0.10.0
libtpu: 0.0.40
codegen_flags: <defaults>
</compile_context>

<pallas_src>
import jax
import jax.numpy as jnp
from jax.experimental import pallas as pl
from jax.experimental.pallas import tpu as pltpu


_LANES = 128            # TPU vreg lane width
_DEF_TILE_ROWS = 2048   # batch rows per grid step (multiple of 128)


def _round_up(n, m):
    return ((n + m - 1) // m) * m


def _lnodds_kernel(x_ref, w_ref, b_ref, o_ref):
    # x_ref: (TBG, 128, 10)  batch-tile of inputs, features on lanes
    # w_ref: (1, 1, 10)      weight row vector (lane-aligned)
    # b_ref: (1,)  in SMEM   scalar bias
    # o_ref: (TBG, 128)      lane-dense output slab (one result per batch row)
    x = x_ref[...]
    w = w_ref[...]
    b = b_ref[0]
    # VPU elementwise multiply + cross-lane sum over the 10 features; no MXU.
    y = jnp.sum(x * w, axis=-1) + b
    o_ref[...] = y.astype(o_ref.dtype)


def lnodds_forward(x, weight, bias, *, tile_rows=_DEF_TILE_ROWS):
    """y = x @ weight.T + bias  (PyTorch nn.Linear(10, 1) semantics).

    Args:
      x:      (B, 10) float32
      weight: (1, 10) float32   -- PyTorch layout (out_features, in_features)
      bias:   (1,)    float32
    Returns:
      (B, 1) float32
    """
    B, in_f = x.shape
    out_f = weight.shape[0]
    assert out_f == 1 and weight.shape[1] == in_f

    # Batch tile: multiple of 128 rows, capped at tile_rows, never bigger than
    # the (rounded-up) batch itself.
    tb = min(_round_up(tile_rows, _LANES), _round_up(B, _LANES))
    bp = _round_up(B, tb)
    tbg = tb // _LANES
    grid = (bp // tb,)

    xp = x if bp == B else jnp.pad(x, ((0, bp - B), (0, 0)))
    # Free row-major reshape: batch row r -> x3[r // 128, r % 128, :].
    x3 = xp.reshape(bp // _LANES, _LANES, in_f)
    w3 = weight.reshape(1, 1, in_f)       # lane-aligned weight row
    b1 = bias.reshape(1)                  # scalar bias for SMEM

    out = pl.pallas_call(
        _lnodds_kernel,
        out_shape=jax.ShapeDtypeStruct((bp // _LANES, _LANES), x.dtype),
        grid=grid,
        in_specs=[
            pl.BlockSpec((tbg, _LANES, in_f), lambda i: (i, 0, 0)),
            pl.BlockSpec((1, 1, in_f), lambda i: (0, 0, 0)),
            pl.BlockSpec(memory_space=pltpu.MemorySpace.SMEM),
        ],
        out_specs=pl.BlockSpec((tbg, _LANES), lambda i: (i, 0)),
        compiler_params=pltpu.CompilerParams(
            dimension_semantics=("parallel",),
        ),
    )(x3, w3, b1)

    # Undo the lane packing: (bp//128, 128) row-major == (bp,) in batch order.
    return out.reshape(bp, 1)[:B]


if __name__ == "__main__":
    key = jax.random.PRNGKey(0)
    kx, kw, kb = jax.random.split(key, 3)

    B, IN_F, OUT_F = 8, 10, 1

    # Deterministic parameter init (mimics PyTorch Linear's U(-1/sqrt(fan_in), ...)).
    bound = 1.0 / (IN_F ** 0.5)
    weight = jax.random.uniform(kw, (OUT_F, IN_F), jnp.float32, -bound, bound)
    bias = jax.random.uniform(kb, (OUT_F,), jnp.float32, -bound, bound)

    x = jax.random.normal(kx, (B, IN_F), jnp.float32)

    y = lnodds_forward(x, weight, bias)
    jax.block_until_ready(y)

    # Sanity check against plain JAX reference.
    y_ref = x @ weight.T + bias
    assert y.shape == (B, OUT_F)
    assert jnp.allclose(y, y_ref, atol=1e-5, rtol=1e-5), "mismatch vs reference"

    print("KERNEL_OK")
</pallas_src>

<mosaic_0001>
module attributes {stable_mosaic.version = 11 : i64} {
  func.func @_lnodds_kernel(%arg0: i32, %arg1: memref<1x128x10xf32, #tpu.memory_space<vmem>>, %arg2: memref<1x1x10xf32, #tpu.memory_space<vmem>>, %arg3: memref<1xf32, #tpu.memory_space<smem>>, %arg4: memref<1x128xf32, #tpu.memory_space<vmem>>) attributes {dimension_semantics = [#tpu.dimension_semantics<parallel>], iteration_bounds = array<i64: 1>, scalar_prefetch = 0 : i64, scratch_operands = 0 : i64, tpu.core_type = #tpu.core_type<tc>, window_params = [{transform_indices = @transform_0, window_bounds = array<i64: 1, 128, 10>}, {pipeline_mode = #tpu.pipeline_mode<synchronous>, transform_indices = @transform_1, window_bounds = array<i64: 1, 1, 10>}, {transform_indices = @transform_2, window_bounds = array<i64: 1>}, {transform_indices = @transform_3, window_bounds = array<i64: 1, 128>}]} {
    %c0 = arith.constant 0 : index
    %c0_0 = arith.constant 0 : index
    %c0_1 = arith.constant 0 : index
    %0 = vector.load %arg1[%c0, %c0_0, %c0_1] : memref<1x128x10xf32, #tpu.memory_space<vmem>>, vector<1x128x10xf32>
    %c0_2 = arith.constant 0 : index
    %c0_3 = arith.constant 0 : index
    %c0_4 = arith.constant 0 : index
    %1 = vector.load %arg2[%c0_2, %c0_3, %c0_4] : memref<1x1x10xf32, #tpu.memory_space<vmem>>, vector<1x1x10xf32>
    %c0_5 = arith.constant 0 : index
    %2 = memref.load %arg3[%c0_5] : memref<1xf32, #tpu.memory_space<smem>>
    %3 = vector.broadcast %1 : vector<1x1x10xf32> to vector<1x128x10xf32>
    %4 = arith.mulf %0, %3 : vector<1x128x10xf32>
    %cst = arith.constant dense<0.000000e+00> : vector<1x128xf32>
    %5 = vector.multi_reduction <add>, %4, %cst [2] : vector<1x128x10xf32> to vector<1x128xf32>
    %6 = vector.broadcast %2 : f32 to vector<1x128xf32>
    %7 = arith.addf %5, %6 : vector<1x128xf32>
    %c0_6 = arith.constant 0 : index
    %c0_7 = arith.constant 0 : index
    %8 = vector.load %arg4[%c0_6, %c0_7] : memref<1x128xf32, #tpu.memory_space<vmem>>, vector<1x128xf32>
    tpu.vector_store %arg4[%c0_6, %c0_7], %7 {strides = array<i32>} : memref<1x128xf32, #tpu.memory_space<vmem>>, vector<1x128xf32>,
    return
  }
  func.func @transform_0(%arg0: i32) -> (i32, i32, i32) {
    %c0_i32 = arith.constant 0 : i32
    %c0_i32_0 = arith.constant 0 : i32
    %c0_i32_1 = arith.constant 0 : i32
    return %arg0, %c0_i32, %c0_i32_0 : i32, i32, i32
  }
  func.func @transform_1(%arg0: i32) -> (i32, i32, i32) {
    %c0_i32 = arith.constant 0 : i32
    %c0_i32_0 = arith.constant 0 : i32
    %c0_i32_1 = arith.constant 0 : i32
    %c0_i32_2 = arith.constant 0 : i32
    return %c0_i32, %c0_i32_0, %c0_i32_1 : i32, i32, i32
  }
  func.func @transform_2(%arg0: i32) -> i32 {
    %c0_i32 = arith.constant 0 : i32
    %c0_i32_0 = arith.constant 0 : i32
    return %c0_i32 : i32
  }
  func.func @transform_3(%arg0: i32) -> (i32, i32) {
    %c0_i32 = arith.constant 0 : i32
    %c0_i32_0 = arith.constant 0 : i32
    return %arg0, %c0_i32 : i32, i32
  }
}

</mosaic_0001>

<bundles_post_ra>
// kernel: tpu_custom_call.1
= control target key start
LH: loop header
LB: loop body
LE: loop exit
PB: predicated region body
PF: predicated region fallthrough
CT: control target
= control target key end

     0   :  { %vm53_vm0 = vcmask 80896   ;;  %s392_s0 = inlined_call_operand.vmem [shape: f32[1,128,10], index: 0, kind: input, shape index: {}]   ;;  %s393_s1 = inlined_call_operand.vmem [shape: f32[1,1,10], index: 1, kind: input, shape index: {}]   ;;  %s394_s2 = inlined_call_operand.<no memory space> [shape: f32[1], index: 2, kind: input, shape index: {}]   ;;  %s395_s3 = inlined_call_operand.hbm [shape: f32[1,128], index: 3, kind: output, shape index: {}]  }
   0x1   :  { %v16_v0 = vld [vmem:[%s392_s0] sm:$0xff]  ;;  %v18_v2 = vld [vmem:[%s392_s0 + $0x10] sm:$0xff]  ;;  %v17_v7 = vld [vmem:[%s392_s0 + $0x8] sm:$0xff] }
   0x2   :  { %v271_v1 = vld [vmem:[%s393_s1] ss:$0 sm:$0xff]  ;;  %v19_v8 = vld [vmem:[%s392_s0 + $0x18] sm:$0xff]  ;;  %v21_v12 = vld [vmem:[%s392_s0 + $0x28] sm:$0xff] }
   0x3   :  { %v20_v3 = vld [vmem:[%s392_s0 + $0x20] sm:$0xff]  ;;  %v37_v4 = vmul.f32 %v271_v1, %v16_v0  ;;  %v39_v5 = vmul.f32 %v271_v1, %v18_v2  ;;  %v38_v13 = vmul.f32 %v271_v1, %v17_v7  ;;  %v40_v14 = vmul.f32 %v271_v1, %v19_v8 }
   0x4   :  { %v41_v6 = vmul.f32 %v271_v1, %v20_v3 }
   0x5   :  { %v54_v9 = vsel %vm53_vm0, %v37_v4, 0.0  ;;  %v60_v10 = vsel %vm53_vm0, %v39_v5, 0.0 }
   0x6   :  { %v66_v11 = vsel %vm53_vm0, %v41_v6, 0.0  ;;  %55 = vadd.xlane.f32.xlu0 %v54_v9  ;;  %61 = vadd.xlane.f32.xlu1 %v60_v10 }
   0x7   :  { %67 = vadd.xlane.f32.xlu2 %v66_v11 }
   0x8   :  { %9 = vsyncpa [#allocation4], 0  ;;  %v42_v15 = vmul.f32 %v271_v1, %v21_v12  ;;  %v57_v16 = vsel %vm53_vm0, %v38_v13, 0.0  ;;  %v63_v17 = vsel %vm53_vm0, %v40_v14, 0.0  ;;  %v22_v19 = vld [vmem:[%s392_s0 + $0x30] sm:$0xff]  ;;  %v23_v20 = vld [vmem:[%s392_s0 + $0x38] sm:$0xff]  ;;  %v135_v51 = vlaneseq }
   0x9   :  { %v24_v21 = vld [vmem:[%s392_s0 + $0x40] sm:$0xff]  ;;  %v43_v22 = vmul.f32 %v271_v1, %v22_v19  ;;  %v44_v23 = vmul.f32 %v271_v1, %v23_v20  ;;  %v25_v28 = vld [vmem:[%s392_s0 + $0x48] sm:$0xff]  ;;  %v26_v29 = vld [vmem:[%s392_s0 + $0x50] sm:$0xff]  ;;  %v353_v53 = vstv %s394_s2  ;;  %vm140_vm1 = vcmask 130112   ;;  %s207_s1 = sshll.u32 %s395_s3, 4  ;;  %s208_s1 = int_to_ptr.hbm [resolvable:$true] %s207_s1 }
   0xa   :  { %v69_v18 = vsel %vm53_vm0, %v42_v15, 0.0  ;;  %v45_v24 = vmul.f32 %v271_v1, %v24_v21  ;;  %v27_v30 = vld [vmem:[%s392_s0 + $0x58] sm:$0xff]  ;;  %v46_v31 = vmul.f32 %v271_v1, %v25_v28  ;;  %v47_v32 = vmul.f32 %v271_v1, %v26_v29  ;;  %v28_v37 = vld [vmem:[%s392_s0 + $0x60] sm:$0xff]  ;;  %v29_v38 = vld [vmem:[%s392_s0 + $0x68] sm:$0xff] }
   0xb   :  { %v72_v25 = vsel %vm53_vm0, %v43_v22, 0.0  ;;  %v75_v26 = vsel %vm53_vm0, %v44_v23, 0.0  ;;  %v48_v33 = vmul.f32 %v271_v1, %v27_v30  ;;  %v30_v39 = vld [vmem:[%s392_s0 + $0x70] sm:$0xff]  ;;  %v49_v40 = vmul.f32 %v271_v1, %v28_v37  ;;  %v31_v46 = vld [vmem:[%s392_s0 + $0x78] sm:$0xff]  ;;  %s244_s0 = smov [#allocation3]  }
   0xc   :  { %v78_v27 = vsel %vm53_vm0, %v45_v24, 0.0  ;;  %v81_v34 = vsel %vm53_vm0, %v46_v31, 0.0  ;;  %v84_v35 = vsel %vm53_vm0, %v47_v32, 0.0  ;;  %v50_v41 = vmul.f32 %v271_v1, %v29_v38  ;;  %s205_s2 = sshll.u32 %s244_s0, 4  ;;  %s206_s2 = int_to_ptr.vmem [resolvable:$true] %s205_s2 }
   0xd   :  { %v87_v36 = vsel %vm53_vm0, %v48_v33, 0.0  ;;  %v51_v42 = vmul.f32 %v271_v1, %v30_v39  ;;  %v90_v43 = vsel %vm53_vm0, %v49_v40, 0.0  ;;  %v52_v47 = vmul.f32 %v271_v1, %v31_v46 }
   0xe   :  { %58 = vadd.xlane.f32.xlu0 %v57_v16  ;;  %64 = vadd.xlane.f32.xlu1 %v63_v17  ;;  %v93_v44 = vsel %vm53_vm0, %v50_v41, 0.0  ;;  %v355_v54 = vand.u32 127, %v135_v51  ;;  %vm144_vm2 = vcmask 195712   ;;  %vm148_vm3 = vcmask 261312  }
   0xf   :  { %70 = vadd.xlane.f32.xlu2 %v69_v18  ;;  %v96_v45 = vsel %vm53_vm0, %v51_v42, 0.0  ;;  %v99_v48 = vsel %vm53_vm0, %v52_v47, 0.0  ;;  %vm152_vm4 = vcmask 326912   ;;  %vm156_vm5 = vcmask 392512  }
  0x10   :  { %v138_v56 = vadd.s32 4294967288, %v355_v54  ;;  %v142_v57 = vadd.s32 4294967280, %v355_v54  ;;  %v146_v62 = vadd.s32 4294967272, %v355_v54  ;;  %v150_v6 = vadd.s32 4294967264, %v355_v54 }
  0x11   :  { %v154_v9 = vadd.s32 4294967256, %v355_v54  ;;  %v158_v11 = vadd.s32 4294967248, %v355_v54  ;;  %v162_v19 = vadd.s32 4294967240, %v355_v54  ;;  %vm160_vm6 = vcmask 458112  }
  0x12   :  { %v166_v23 = vadd.s32 4294967232, %v355_v54  ;;  %vm164_vm7 = vcmask 523712   ;;  %vm168_vm8 = vcmask 589312   ;;  %vm172_vm9 = vcmask 654912  }
  0x13   :  { %v178_v38 = vadd.s32 4294967208, %v355_v54  ;;  %vm176_vm10 = vcmask 720512   ;;  %vm180_vm11 = vcmask 786112   ;;  %vm184_vm12 = vcmask 851712  }
  0x14   :  { %vm188_vm13 = vcmask 917312   ;;  %vm192_vm14 = vcmask 982912   ;;  %vm196_vm15 = vcmask 1048512  }
  0x16   :  { %73 = vadd.xlane.f32.xlu0 %v72_v25  ;;  %76 = vadd.xlane.f32.xlu1 %v75_v26 }
  0x17   :  { %79 = vadd.xlane.f32.xlu2 %v78_v27  ;;  %v170_v27 = vadd.s32 4294967224, %v355_v54 }
  0x1e   :  { %82 = vadd.xlane.f32.xlu0 %v81_v34  ;;  %85 = vadd.xlane.f32.xlu1 %v84_v35  ;;  %v174_v34 = vadd.s32 4294967216, %v355_v54 }
  0x1f   :  { %88 = vadd.xlane.f32.xlu2 %v87_v36 }
  0x26   :  { %91 = vadd.xlane.f32.xlu0 %v90_v43  ;;  %94 = vadd.xlane.f32.xlu1 %v93_v44  ;;  %v182_v43 = vadd.s32 4294967200, %v355_v54 }
  0x27   :  { %97 = vadd.xlane.f32.xlu2 %v96_v45 }
  0x2e   :  { %100 = vadd.xlane.f32.xlu0 %v99_v48  ;;  %v186_v48 = vadd.s32 4294967192, %v355_v54 }
  0x79   :  { %v56_v49 = vpop.xlane.xlu0 %55  ;;  %v62_v50 = vpop.xlane.xlu1 %61 }
  0x7a   :  { %v68_v52 = vpop.xlane.xlu2 %67  ;;  %v103_v55 = vadd.f32 %v353_v53, %v56_v49  ;;  %v105_v58 = vadd.f32 %v353_v53, %v62_v50 }
  0x7b   :  { %v107_v7 = vadd.f32 %v353_v53, %v68_v52 }
  0x7c   :  { %v137_v1 = vperm.slane %v103_v55, %v355_v54  ;;  %v143_v3 = vperm.slane %v105_v58, %v142_v57  ;;  %v190_v55 = vadd.s32 4294967184, %v355_v54 }
  0x7d   :  { %v151_v17 = vperm.slane %v107_v7, %v150_v6 }
  0x81   :  { %v59_v59 = vpop.xlane.xlu0 %58  ;;  %v65_v60 = vpop.xlane.xlu1 %64 }
  0x82   :  { %v104_v61 = vadd.f32 %v353_v53, %v59_v59  ;;  %v106_v63 = vadd.f32 %v353_v53, %v65_v60  ;;  %v71_v0 = vpop.xlane.xlu2 %70  ;;  %v194_v60 = vadd.s32 4294967176, %v355_v54 }
  0x83   :  { %v108_v10 = vadd.f32 %v353_v53, %v71_v0 }
  0x84   :  { %v139_v2 = vperm.slane %v104_v61, %v138_v56  ;;  %v147_v5 = vperm.slane %v106_v63, %v146_v62 }
  0x85   :  { %v155_v18 = vperm.slane %v108_v10, %v154_v9 }
  0x86   :  { %v141_v4 = vsel %vm140_vm1, %v139_v2, %v137_v1 }
  0x87   :  { %v145_v8 = vsel %vm144_vm2, %v143_v3, %v141_v4 }
  0x88   :  { %v149_v14 = vsel %vm148_vm3, %v147_v5, %v145_v8 }
  0x89   :  { %v74_v12 = vpop.xlane.xlu0 %73  ;;  %v77_v13 = vpop.xlane.xlu1 %76  ;;  %v153_v21 = vsel %vm152_vm4, %v151_v17, %v149_v14 }
  0x8a   :  { %v109_v15 = vadd.f32 %v353_v53, %v74_v12  ;;  %v80_v16 = vpop.xlane.xlu2 %79  ;;  %v110_v20 = vadd.f32 %v353_v53, %v77_v13  ;;  %v157_v25 = vsel %vm156_vm5, %v155_v18, %v153_v21 }
  0x8b   :  { %v111_v24 = vadd.f32 %v353_v53, %v80_v16 }
  0x8c   :  { %v159_v22 = vperm.slane %v109_v15, %v158_v11  ;;  %v163_v26 = vperm.slane %v110_v20, %v162_v19 }
  0x8d   :  { %v167_v33 = vperm.slane %v111_v24, %v166_v23 }
  0x8e   :  { %v161_v28 = vsel %vm160_vm6, %v159_v22, %v157_v25 }
  0x8f   :  { %v165_v36 = vsel %vm164_vm7, %v163_v26, %v161_v28 }
  0x90   :  { %v169_v40 = vsel %vm168_vm8, %v167_v33, %v165_v36 }
  0x91   :  { %v83_v29 = vpop.xlane.xlu0 %82  ;;  %v86_v30 = vpop.xlane.xlu1 %85 }
  0x92   :  { %v112_v31 = vadd.f32 %v353_v53, %v83_v29  ;;  %v89_v32 = vpop.xlane.xlu2 %88  ;;  %v113_v35 = vadd.f32 %v353_v53, %v86_v30 }
  0x93   :  { %v114_v39 = vadd.f32 %v353_v53, %v89_v32 }
  0x94   :  { %v171_v37 = vperm.slane %v112_v31, %v170_v27  ;;  %v175_v41 = vperm.slane %v113_v35, %v174_v34 }
  0x95   :  { %v179_v46 = vperm.slane %v114_v39, %v178_v38 }
  0x96   :  { %v173_v42 = vsel %vm172_vm9, %v171_v37, %v169_v40 }
  0x97   :  { %v177_v51 = vsel %vm176_vm10, %v175_v41, %v173_v42 }
  0x98   :  { %v181_v57 = vsel %vm180_vm11, %v179_v46, %v177_v51 }
  0x99   :  { %v92_v44 = vpop.xlane.xlu0 %91  ;;  %v95_v45 = vpop.xlane.xlu1 %94 }
  0x9a   :  { %v115_v47 = vadd.f32 %v353_v53, %v92_v44  ;;  %v116_v49 = vadd.f32 %v353_v53, %v95_v45  ;;  %v98_v50 = vpop.xlane.xlu2 %97 }
  0x9b   :  { %v117_v56 = vadd.f32 %v353_v53, %v98_v50 }
  0x9c   :  { %v183_v52 = vperm.slane %v115_v47, %v182_v43  ;;  %v187_v58 = vperm.slane %v116_v49, %v186_v48 }
  0x9d   :  { %v191_v61 = vperm.slane %v117_v56, %v190_v55 }
  0x9e   :  { %v185_v59 = vsel %vm184_vm12, %v183_v52, %v181_v57 }
  0x9f   :  { %v189_v63 = vsel %vm188_vm13, %v187_v58, %v185_v59 }
  0xa0   :  { %v193_v2 = vsel %vm192_vm14, %v191_v61, %v189_v63 }
  0xa1   :  { %v101_v62 = vpop.xlane.xlu0 %100 }
  0xa2   :  { %v118_v0 = vadd.f32 %v353_v53, %v101_v62 }
  0xa4   :  { %v195_v1 = vperm.slane %v118_v0, %v194_v60 }
  0xa6   :  { %v197_v3 = vsel %vm196_vm15, %v195_v1, %v193_v2 }
  0xa7   :  { %199 = vst [vmem:[#allocation3] sm:$0x1] %v197_v3 }
  0xa8   :  { %210 = dma.vmem_to_hbm [thread:$0]  %s206_s2, 16, %s208_s1, [#allocation4]  }
  0xa9   :  { %242 = dma.done.wait [#allocation4], 16  }
  0xaa   :  { %243 = vsyncadd [#allocation4], 4294967280 }
  0xab   :  { %215 = vsyncpa [#allocation4], 1 }

</bundles_post_ra>
